<compile_context>
chip_gen: v7x
topology: tpu7x:2x2x1
jax: 0.10.0
libtpu: 0.0.40
codegen_flags: <defaults>
</compile_context>

<pallas_src>
import jax
import jax.numpy as jnp
from jax import lax
from jax.experimental import pallas as pl
from jax.experimental.pallas import tpu as pltpu

_LANE = 128


def _classifier_head_kernel(x_ref, w_ref, b_ref, o_ref):
    """Fused global-average-pool + Linear classifier for one batch tile.

    x_ref : (TN, C, HW) activation tile in its native dtype (bf16/f32)
    w_ref : (K, C)      fc weight, torch nn.Linear layout (not transposed)
    b_ref : (1, K)      fc bias
    o_ref : (TN, K)     logits tile
    """
    hw = x_ref.shape[-1]  # static

    # ---- global average pool -------------------------------------------------
    # Accumulate 128-lane chunks with VPU adds (streamed ref slices keep live
    # vregs bounded), then a single cross-lane (XLU) reduction at the end.
    n_full = hw // _LANE
    rem = hw - n_full * _LANE
    if n_full >= 1:
        acc = x_ref[:, :, 0:_LANE].astype(jnp.float32)
        for i in range(1, n_full):
            acc = acc + x_ref[:, :, i * _LANE:(i + 1) * _LANE].astype(jnp.float32)
        pooled = jnp.sum(acc, axis=-1)                                  # (TN, C)
        if rem:
            tail = x_ref[:, :, n_full * _LANE:hw].astype(jnp.float32)
            pooled = pooled + jnp.sum(tail, axis=-1)
    else:
        pooled = jnp.sum(x_ref[...].astype(jnp.float32), axis=-1)       # (TN, C)
    pooled = pooled * (1.0 / hw)

    # ---- fc (Linear) on the MXU, f32 accumulation, bias fused ----------------
    # Contract pooled's C against weight's C directly (no wrapper transpose).
    logits = lax.dot_general(
        pooled, w_ref[...].astype(jnp.float32),
        dimension_numbers=(((1,), (1,)), ((), ())),
        preferred_element_type=jnp.float32)                              # (TN, K)
    o_ref[...] = (logits + b_ref[...].astype(jnp.float32)).astype(o_ref.dtype)


def classifier_head(x_nchw, fc_weight, fc_bias, *, out_dtype=None):
    """ClassifierHead forward (pre_logits=False).

    x_nchw   : (N, C, H, W) NCHW activations (native dtype, e.g. bf16/f32)
    fc_weight: (K, C)       torch nn.Linear weight layout (NOT transposed)
    fc_bias  : (K,)         torch nn.Linear bias
    returns  : (N, K) logits in `out_dtype` (defaults to x's dtype)
    """
    n, c, h, w = x_nchw.shape
    k = fc_weight.shape[0]
    hw = h * w
    out_dtype = out_dtype or x_nchw.dtype

    # Free view (NCHW is contiguous over H*W); native dtype, no XLA up-cast.
    x_flat = x_nchw.reshape(n, c, hw)
    b_k = fc_bias.reshape(1, k)

    # Batch tile: keep 2 (double-buffer) x TN x C x HW x itemsize <= ~16 MiB so
    # the pipelined working set fits v7x's 64 MiB per-TC VMEM and v5e's 16 MiB
    # default scoped limit.
    tile_budget_bytes = 8 * 1024 * 1024
    bytes_per_row = c * hw * x_flat.dtype.itemsize
    tn = max(1, min(n, tile_budget_bytes // max(1, bytes_per_row)))
    if tn < n:
        # out BlockSpec's second-to-last dim must be a multiple of 8 (or full N).
        tn = max(8, (tn // 8) * 8)
    grid = (pl.cdiv(n, tn),)
    # TODO(synk): for num_classes not a multiple of 128 (e.g. 1000), pad K to
    # the next multiple of 128 for a lane-dense output store and slice in the
    # wrapper.

    return pl.pallas_call(
        _classifier_head_kernel,
        out_shape=jax.ShapeDtypeStruct((n, k), out_dtype),
        grid_spec=pltpu.PrefetchScalarGridSpec(
            num_scalar_prefetch=0,
            grid=grid,
            in_specs=[
                pl.BlockSpec((tn, c, hw), lambda i: (i, 0, 0)),  # x: double-buffered tiles
                pl.BlockSpec((k, c), lambda i: (0, 0)),          # weight: VMEM-resident
                pl.BlockSpec((1, k), lambda i: (0, 0)),          # bias: VMEM-resident
            ],
            out_specs=pl.BlockSpec((tn, k), lambda i: (i, 0)),
        ),
        compiler_params=pltpu.CompilerParams(
            dimension_semantics=("parallel",),  # shard batch tiles across v7x's 2 TCs
        ),
    )(x_flat, fc_weight, b_k)


def _reference(x_nchw, fc_weight, fc_bias):
    """Pure-JAX reference mimicking the PyTorch ClassifierHead forward."""
    pooled = jnp.mean(x_nchw.astype(jnp.float32), axis=(2, 3))           # (N, C)
    return pooled @ fc_weight.astype(jnp.float32).T + fc_bias.astype(jnp.float32)


if __name__ == "__main__":
    key = jax.random.PRNGKey(0)
    k_x, k_w, k_b = jax.random.split(key, 3)

    # ClassifierHead(in_features=128, num_classes=128, pool_type='avg',
    #                use_conv=False, input_fmt='NCHW')
    N, C, H, W = 2, 128, 16, 16
    K = 128  # num_classes

    x = jax.random.normal(k_x, (N, C, H, W), dtype=jnp.float32)
    fc_weight = jax.random.normal(k_w, (K, C), dtype=jnp.float32) * 0.05
    fc_bias = jax.random.normal(k_b, (K,), dtype=jnp.float32) * 0.1

    out = classifier_head(x, fc_weight, fc_bias)
    out = jax.block_until_ready(out)

    ref = _reference(x, fc_weight, fc_bias)
    assert out.shape == (N, K), out.shape
    err = float(jnp.max(jnp.abs(out.astype(jnp.float32) - ref)))
    assert jnp.allclose(out.astype(jnp.float32), ref, atol=1e-4, rtol=1e-4), err

    print("KERNEL_OK")
</pallas_src>

<mosaic_0001>
module attributes {stable_mosaic.version = 11 : i64} {
  func.func @_classifier_head_kernel(%arg0: i32, %arg1: memref<2x128x256xf32, #tpu.memory_space<vmem>>, %arg2: memref<128x128xf32, #tpu.memory_space<vmem>>, %arg3: memref<1x128xf32, #tpu.memory_space<vmem>>, %arg4: memref<2x128xf32, #tpu.memory_space<vmem>>) attributes {dimension_semantics = [#tpu.dimension_semantics<parallel>], iteration_bounds = array<i64: 1>, scalar_prefetch = 0 : i64, scratch_operands = 0 : i64, tpu.core_type = #tpu.core_type<tc>, window_params = [{transform_indices = @transform_0, window_bounds = array<i64: 2, 128, 256>}, {pipeline_mode = #tpu.pipeline_mode<synchronous>, transform_indices = @transform_1, window_bounds = array<i64: 128, 128>}, {pipeline_mode = #tpu.pipeline_mode<synchronous>, transform_indices = @transform_2, window_bounds = array<i64: 1, 128>}, {transform_indices = @transform_3, window_bounds = array<i64: 2, 128>}]} {
    %c0 = arith.constant 0 : index
    %c0_0 = arith.constant 0 : index
    %c0_1 = arith.constant 0 : index
    %0 = vector.load %arg1[%c0, %c0_0, %c0_1] : memref<2x128x256xf32, #tpu.memory_space<vmem>>, vector<2x128x128xf32>
    %c0_2 = arith.constant 0 : index
    %c0_3 = arith.constant 0 : index
    %c128 = arith.constant 128 : index
    %1 = vector.load %arg1[%c0_2, %c0_3, %c128] : memref<2x128x256xf32, #tpu.memory_space<vmem>>, vector<2x128x128xf32>
    %2 = arith.addf %0, %1 : vector<2x128x128xf32>
    %cst = arith.constant dense<0.000000e+00> : vector<2x128xf32>
    %3 = vector.multi_reduction <add>, %2, %cst [2] : vector<2x128x128xf32> to vector<2x128xf32>
    %cst_4 = arith.constant 3.906250e-03 : f32
    %4 = vector.broadcast %cst_4 : f32 to vector<2x128xf32>
    %5 = arith.mulf %3, %4 : vector<2x128xf32>
    %c0_5 = arith.constant 0 : index
    %c0_6 = arith.constant 0 : index
    %6 = vector.load %arg2[%c0_5, %c0_6] : memref<128x128xf32, #tpu.memory_space<vmem>>, vector<128x128xf32>
    %cst_7 = arith.constant dense<0.000000e+00> : vector<2x128xf32>
    %7 = tpu.matmul %5, %6, %cst_7 {dimension_numbers = #tpu.dot_dimension_numbers<[1], [1], [0], [0], [0, 0, 1, 0], [], []>} : vector<2x128xf32>, vector<128x128xf32>, vector<2x128xf32> -> vector<2x128xf32>
    %c0_8 = arith.constant 0 : index
    %c0_9 = arith.constant 0 : index
    %8 = vector.load %arg3[%c0_8, %c0_9] : memref<1x128xf32, #tpu.memory_space<vmem>>, vector<1x128xf32>
    %9 = vector.broadcast %8 : vector<1x128xf32> to vector<2x128xf32>
    %10 = arith.addf %7, %9 : vector<2x128xf32>
    %c0_10 = arith.constant 0 : index
    %c0_11 = arith.constant 0 : index
    %11 = vector.load %arg4[%c0_10, %c0_11] : memref<2x128xf32, #tpu.memory_space<vmem>>, vector<2x128xf32>
    tpu.vector_store %arg4[%c0_10, %c0_11], %10 {strides = array<i32>} : memref<2x128xf32, #tpu.memory_space<vmem>>, vector<2x128xf32>,
    return
  }
  func.func @transform_0(%arg0: i32) -> (i32, i32, i32) {
    %c0_i32 = arith.constant 0 : i32
    %c0_i32_0 = arith.constant 0 : i32
    %c0_i32_1 = arith.constant 0 : i32
    return %arg0, %c0_i32, %c0_i32_0 : i32, i32, i32
  }
  func.func @transform_1(%arg0: i32) -> (i32, i32) {
    %c0_i32 = arith.constant 0 : i32
    %c0_i32_0 = arith.constant 0 : i32
    %c0_i32_1 = arith.constant 0 : i32
    return %c0_i32, %c0_i32_0 : i32, i32
  }
  func.func @transform_2(%arg0: i32) -> (i32, i32) {
    %c0_i32 = arith.constant 0 : i32
    %c0_i32_0 = arith.constant 0 : i32
    %c0_i32_1 = arith.constant 0 : i32
    return %c0_i32, %c0_i32_0 : i32, i32
  }
  func.func @transform_3(%arg0: i32) -> (i32, i32) {
    %c0_i32 = arith.constant 0 : i32
    %c0_i32_0 = arith.constant 0 : i32
    return %arg0, %c0_i32 : i32, i32
  }
}

</mosaic_0001>

<bundles_post_ra>
// kernel: tpu_custom_call.1
= control target key start
LH: loop header
LB: loop body
LE: loop exit
PB: predicated region body
PF: predicated region fallthrough
CT: control target
= control target key end

     0   :  { %8 = vsyncpa [#allocation3], 0  ;;  %s939_s0 = inlined_call_operand.hbm [shape: f32[2,128,256], index: 0, kind: input, shape index: {}]   ;;  %s940_s1 = inlined_call_operand.hbm [shape: f32[128,128], index: 1, kind: input, shape index: {}]   ;;  %s941_s2 = inlined_call_operand.vmem [shape: f32[1,128], index: 2, kind: input, shape index: {}]   ;;  %s942_s3 = inlined_call_operand.hbm [shape: f32[2,128], index: 3, kind: output, shape index: {}]  }
   0x1   :  { %9 = vsyncpa [#allocation6], 0 }
   0x2   :  { %10 = vsyncpa [#allocation4], 0  ;;  %s729_s12 = smov [#allocation2]   ;;  %s657_s16 = scalar_lea.hbm %s939_s0, 8192 }
   0x3   :  { %s16_s13 = sshll.u32 %s729_s12, 4  ;;  %p658_p0 = scmp.ne.s32.totalorder %s939_s0, %s657_s16  ;;  %s17_s13 = int_to_ptr.vmem [resolvable:$true] %s16_s13 }
   0x4   :  { %p661_p1 = scmp.lt.u32.totalorder %s657_s16, %s939_s0 }
   0x6   :  { %p663_p2 = pnand %p661_p1, %p658_p0 }
   0x8   :  { %666 = shalt.err (!%p663_p2)
}
   0x9   :  { %s667_s21 = scalar_lea.vmem %s17_s13, 8192  ;;  %p672_p4 = scmp.lt.s32.totalorder %s17_s13, %s17_s13 }
   0xa   :  { %p668_p3 = scmp.ne.s32.totalorder %s17_s13, %s667_s21  ;;  %p673_p5 = scmp.lt.s32.totalorder %s667_s21, %s667_s21 }
   0xc   :  { %p674_p6 = por %p673_p5, %p672_p4 }
   0xe   :  { %p675_p7 = pnand %p674_p6, %p668_p3 }
  0x10   :  { %678 = shalt.err (!%p675_p7)
}
  0x11   :  { %s730_s22 = smov 256   ;;  %s731_s23 = smov 16  }
  0x12   :  { %22 = dma.hbm_to_vmem [thread:$0]  %s939_s0, 8192, %s17_s13, [#allocation3], %s730_s22, %s730_s22, %s731_s23  }
  0x13   :  { %s732_s26 = smov [#allocation5]   ;;  %s679_s30 = scalar_lea.hbm %s940_s1, 2048 }
  0x14   :  { %s28_s27 = sshll.u32 %s732_s26, 4  ;;  %p680_p8 = scmp.ne.s32.totalorder %s940_s1, %s679_s30  ;;  %s29_s27 = int_to_ptr.vmem [resolvable:$true] %s28_s27 }
  0x15   :  { %p683_p9 = scmp.lt.u32.totalorder %s679_s30, %s940_s1 }
  0x17   :  { %p685_p10 = pnand %p683_p9, %p680_p8 }
  0x19   :  { %688 = shalt.err (!%p685_p10)
}
  0x1a   :  { %s689_s8 = scalar_lea.vmem %s29_s27, 2048  ;;  %p694_p12 = scmp.lt.s32.totalorder %s29_s27, %s29_s27 }
  0x1b   :  { %p690_p11 = scmp.ne.s32.totalorder %s29_s27, %s689_s8  ;;  %p695_p13 = scmp.lt.s32.totalorder %s689_s8, %s689_s8 }
  0x1d   :  { %p696_p0 = por %p695_p13, %p694_p12 }
  0x1f   :  { %p697_p1 = pnand %p696_p0, %p690_p11 }
  0x21   :  { %700 = shalt.err (!%p697_p1)
}
  0x22   :  { %s733_s0 = smov 128   ;;  %s734_s9 = smov 8  }
  0x23   :  { %34 = dma.hbm_to_vmem [thread:$0]  %s940_s1, 2048, %s29_s27, [#allocation6], %s733_s0, %s733_s0, %s734_s9  }
  0x24   :  { %723 = dma.done.wait [#allocation3], 8192  }
  0x25   :  { %724 = vsyncadd [#allocation3], 4294959104 }
  0x26   :  { %725 = dma.done.wait [#allocation6], 2048  }
  0x27   :  { %726 = vsyncadd [#allocation6], 4294965248  ;;  %v59_v0 = vld [vmem:[#allocation2 + $0x100] sm:$0xff]  ;;  %v91_v1 = vld [vmem:[#allocation2 + $0x108] sm:$0xff]  ;;  %v735_v39 = vmov 0.0|0.0   ;;  %vm736_vm0 = vmmov 0  }
  0x28   :  { %v43_v2 = vld [vmem:[#allocation2] sm:$0xff]  ;;  %v123_v3 = vadd.f32 %v91_v1, %v59_v0  ;;  %v75_v4 = vld [vmem:[#allocation2 + $0x8] sm:$0xff]  ;;  %v60_v5 = vld [vmem:[#allocation2 + $0x110] sm:$0xff]  ;;  %623 = vmatprep.subr.bf16.mxu0 %v735_v39  ;;  %vm301_vm1 = vcmask 130112   ;;  %vm308_vm2 = vcmask 195712   ;;  %vm315_vm3 = vcmask 261312  }
  0x29   :  { %v92_v6 = vld [vmem:[#allocation2 + $0x118] sm:$0xff]  ;;  %v107_v7 = vadd.f32 %v75_v4, %v43_v2  ;;  %v44_v8 = vld [vmem:[#allocation2 + $0x10] sm:$0xff]  ;;  %v61_v12 = vld [vmem:[#allocation2 + $0x120] sm:$0xff]  ;;  %vm322_vm4 = vcmask 326912   ;;  %vm329_vm5 = vcmask 392512   ;;  %vm336_vm6 = vcmask 458112  }
  0x2a   :  { %v76_v9 = vld [vmem:[#allocation2 + $0x18] sm:$0xff]  ;;  %171 = vadd.xlane.f32.xlu1 %v123_v3  ;;  %v124_v10 = vadd.f32 %v92_v6, %v60_v5  ;;  %v93_v13 = vld [vmem:[#allocation2 + $0x128] sm:$0xff]  ;;  %v45_v14 = vld [vmem:[#allocation2 + $0x20] sm:$0xff]  ;;  %vm343_vm7 = vcmask 523712   ;;  %vm350_vm8 = vcmask 589312   ;;  %vm357_vm9 = vcmask 654912  }
  0x2b   :  { %139 = vadd.xlane.f32.xlu0 %v107_v7  ;;  %v108_v11 = vadd.f32 %v76_v9, %v44_v8  ;;  %v77_v15 = vld [vmem:[#allocation2 + $0x28] sm:$0xff]  ;;  %v125_v16 = vadd.f32 %v93_v13, %v61_v12  ;;  %v62_v18 = vld [vmem:[#allocation2 + $0x130] sm:$0xff]  ;;  %v94_v19 = vld [vmem:[#allocation2 + $0x138] sm:$0xff]  ;;  %vm364_vm10 = vcmask 720512   ;;  %vm371_vm11 = vcmask 786112   ;;  %s738_s13 = smov [#allocation7]  }
  0x2c   :  { %v109_v17 = vadd.f32 %v77_v15, %v45_v14  ;;  %v46_v20 = vld [vmem:[#allocation2 + $0x30] sm:$0xff]  ;;  %v78_v21 = vld [vmem:[#allocation2 + $0x38] sm:$0xff]  ;;  %v126_v22 = vadd.f32 %v94_v19, %v62_v18  ;;  %v63_v24 = vld [vmem:[#allocation2 + $0x140] sm:$0xff]  ;;  %vm378_vm12 = vcmask 851712   ;;  %vm385_vm13 = vcmask 917312   ;;  %s560_s14 = sshll.u32 %s738_s13, 4  ;;  %s561_s14 = int_to_ptr.vmem [resolvable:$true] %s560_s14 }
  0x2d   :  { %v110_v23 = vadd.f32 %v78_v21, %v46_v20  ;;  %v95_v25 = vld [vmem:[#allocation2 + $0x148] sm:$0xff]  ;;  %v47_v26 = vld [vmem:[#allocation2 + $0x40] sm:$0xff]  ;;  %v64_v30 = vld [vmem:[#allocation2 + $0x150] sm:$0xff]  ;;  %vm392_vm14 = vcmask 982912   ;;  %vm399_vm15 = vcmask 1048512   ;;  %s701_s15 = scalar_lea.vmem %s561_s14, 32  ;;  %p706_p3 = scmp.lt.s32.totalorder %s561_s14, %s561_s14 }
  0x2e   :  { %173 = vadd.xlane.f32.xlu1 %v124_v10  ;;  %v79_v27 = vld [vmem:[#allocation2 + $0x48] sm:$0xff]  ;;  %v127_v28 = vadd.f32 %v95_v25, %v63_v24  ;;  %v96_v31 = vld [vmem:[#allocation2 + $0x158] sm:$0xff]  ;;  %v48_v32 = vld [vmem:[#allocation2 + $0x50] sm:$0xff]  ;;  %p702_p2 = scmp.ne.s32.totalorder %s561_s14, %s701_s15  ;;  %p707_p4 = scmp.lt.s32.totalorder %s701_s15, %s701_s15 }
  0x2f   :  { %141 = vadd.xlane.f32.xlu0 %v108_v11  ;;  %v111_v29 = vadd.f32 %v79_v27, %v47_v26  ;;  %v80_v33 = vld [vmem:[#allocation2 + $0x58] sm:$0xff]  ;;  %v128_v34 = vadd.f32 %v96_v31, %v64_v30  ;;  %v65_v36 = vld [vmem:[#allocation2 + $0x160] sm:$0xff]  ;;  %v97_v37 = vld [vmem:[#allocation2 + $0x168] sm:$0xff] }
  0x30   :  { %v112_v35 = vadd.f32 %v80_v33, %v48_v32  ;;  %v49_v38 = vld [vmem:[#allocation2 + $0x60] sm:$0xff]  ;;  %v81_v40 = vld [vmem:[#allocation2 + $0x68] sm:$0xff]  ;;  %v129_v44 = vadd.f32 %v97_v37, %v65_v36  ;;  %v66_v46 = vld [vmem:[#allocation2 + $0x170] sm:$0xff]  ;;  %p708_p5 = por %p707_p4, %p706_p3 }
  0x31   :  { %v235_v41 = vld [vmem:[#allocation5] sm:$0xff]  ;;  %v236_v42 = vld [vmem:[#allocation5 + $0x8] sm:$0xff]  ;;  %v113_v45 = vadd.f32 %v81_v40, %v49_v38  ;;  %v98_v47 = vld [vmem:[#allocation2 + $0x178] sm:$0xff] }
  0x32   :  { %175 = vadd.xlane.f32.xlu1 %v125_v16  ;;  %v624_v43 = vpack.c.bf16 %v236_v42, %v235_v41  ;;  %v50_v48 = vld [vmem:[#allocation2 + $0x70] sm:$0xff]  ;;  %v82_v49 = vld [vmem:[#allocation2 + $0x78] sm:$0xff]  ;;  %v130_v52 = vadd.f32 %v98_v47, %v66_v46  ;;  %v67_v54 = vld [vmem:[#allocation2 + $0x180] sm:$0xff]  ;;  %p709_p6 = pnand %p708_p5, %p702_p2 }
  0x33   :  { %143 = vadd.xlane.f32.xlu0 %v109_v17  ;;  %v237_v50 = vld [vmem:[#allocation5 + $0x10] sm:$0xff]  ;;  %v238_v51 = vld [vmem:[#allocation5 + $0x18] sm:$0xff]  ;;  %v114_v53 = vadd.f32 %v82_v49, %v50_v48  ;;  %v99_v55 = vld [vmem:[#allocation2 + $0x188] sm:$0xff] }
  0x34   :  { %625 = vmatpush3.bf16.xpose.msra.mxu0 %v624_v43  ;;  %v627_v56 = vpack.c.bf16 %v238_v51, %v237_v50  ;;  %v51_v57 = vld [vmem:[#allocation2 + $0x80] sm:$0xff]  ;;  %v83_v58 = vld [vmem:[#allocation2 + $0x88] sm:$0xff]  ;;  %v131_v59 = vadd.f32 %v99_v55, %v67_v54  ;;  %v68_v61 = vld [vmem:[#allocation2 + $0x190] sm:$0xff] }
  0x35   :  { %626 = vmatprep.subr.bf16.mxu0 %v735_v39  ;;  %v115_v60 = vadd.f32 %v83_v58, %v51_v57  ;;  %v100_v62 = vld [vmem:[#allocation2 + $0x198] sm:$0xff]  ;;  %v52_v63 = vld [vmem:[#allocation2 + $0x90] sm:$0xff]  ;;  %v239_v1 = vld [vmem:[#allocation5 + $0x20] sm:$0xff]  ;;  %v737_v58 = vmov 0.0  }
  0x36   :  { %177 = vadd.xlane.f32.xlu1 %v126_v22  ;;  %v84_v0 = vld [vmem:[#allocation2 + $0x98] sm:$0xff]  ;;  %v240_v2 = vld [vmem:[#allocation5 + $0x28] sm:$0xff]  ;;  %v132_v3 = vadd.f32 %v100_v62, %v68_v61  ;;  %v69_v5 = vld [vmem:[#allocation2 + $0x1a0] sm:$0xff]  ;;  %620 = vmatprep.mubr.msk.f32.mxu0 %vm736_vm0, %v737_v58  ;;  %vm480_vm0 = vcmask 1041409  }
  0x37   :  { %145 = vadd.xlane.f32.xlu0 %v110_v23  ;;  %v116_v4 = vadd.f32 %v84_v0, %v52_v63  ;;  %v101_v6 = vld [vmem:[#allocation2 + $0x1a8] sm:$0xff]  ;;  %v630_v7 = vpack.c.bf16 %v240_v2, %v239_v1  ;;  %v53_v8 = vld [vmem:[#allocation2 + $0xa0] sm:$0xff]  ;;  %v70_v12 = vld [vmem:[#allocation2 + $0x1b0] sm:$0xff] }
  0x38   :  { %v85_v9 = vld [vmem:[#allocation2 + $0xa8] sm:$0xff]  ;;  %v133_v10 = vadd.f32 %v101_v6, %v69_v5  ;;  %v102_v13 = vld [vmem:[#allocation2 + $0x1b8] sm:$0xff]  ;;  %v54_v14 = vld [vmem:[#allocation2 + $0xb0] sm:$0xff] }
  0x39   :  { %v117_v11 = vadd.f32 %v85_v9, %v53_v8  ;;  %v86_v15 = vld [vmem:[#allocation2 + $0xb8] sm:$0xff]  ;;  %v241_v16 = vld [vmem:[#allocation5 + $0x30] sm:$0xff]  ;;  %v134_v18 = vadd.f32 %v102_v13, %v70_v12  ;;  %v71_v20 = vld [vmem:[#allocation2 + $0x1c0] sm:$0xff]  ;;  %v290_v8 = vlaneseq }
  0x3a   :  { %179 = vadd.xlane.f32.xlu1 %v127_v28  ;;  %v242_v17 = vld [vmem:[#allocation5 + $0x38] sm:$0xff]  ;;  %v118_v19 = vadd.f32 %v86_v15, %v54_v14  ;;  %v103_v21 = vld [vmem:[#allocation2 + $0x1c8] sm:$0xff]  ;;  %v55_v23 = vld [vmem:[#allocation2 + $0xc0] sm:$0xff] }
  0x3b   :  { %147 = vadd.xlane.f32.xlu0 %v111_v29  ;;  %v633_v22 = vpack.c.bf16 %v242_v17, %v241_v16  ;;  %v87_v24 = vld [vmem:[#allocation2 + $0xc8] sm:$0xff]  ;;  %v135_v25 = vadd.f32 %v103_v21, %v71_v20  ;;  %v72_v27 = vld [vmem:[#allocation2 + $0x1d0] sm:$0xff]  ;;  %v104_v28 = vld [vmem:[#allocation2 + $0x1d8] sm:$0xff]  ;;  %v801_v12 = vshrl.u32 %v290_v8, 7 }
  0x3c   :  { %628 = vmatpush3.bf16.xpose.msra.mxu0 %v627_v56  ;;  %v119_v26 = vadd.f32 %v87_v24, %v55_v23  ;;  %v56_v29 = vld [vmem:[#allocation2 + $0xd0] sm:$0xff]  ;;  %v88_v30 = vld [vmem:[#allocation2 + $0xd8] sm:$0xff]  ;;  %v243_v31 = vld [vmem:[#allocation5 + $0x40] sm:$0xff]  ;;  %v136_v33 = vadd.f32 %v104_v28, %v72_v27 }
  0x3d   :  { %629 = vmatprep.subr.bf16.mxu0 %v735_v39  ;;  %v244_v32 = vld [vmem:[#allocation5 + $0x48] sm:$0xff]  ;;  %v57_v38 = vld [vmem:[#allocation2 + $0xe0] sm:$0xff]  ;;  %v74_v43 = vld [vmem:[#allocation2 + $0x1f0] sm:$0xff] }
  0x3e   :  { %181 = vadd.xlane.f32.xlu1 %v128_v34  ;;  %v120_v34 = vadd.f32 %v88_v30, %v56_v29  ;;  %v105_v36 = vld [vmem:[#allocation2 + $0x1e8] sm:$0xff]  ;;  %v636_v37 = vpack.c.bf16 %v244_v32, %v243_v31  ;;  %v90_v46 = vld [vmem:[#allocation2 + $0xf8] sm:$0xff]  ;;  %v245_v47 = vld [vmem:[#allocation5 + $0x50] sm:$0xff] }
  0x3f   :  { %149 = vadd.xlane.f32.xlu0 %v112_v35  ;;  %v73_v35 = vld [vmem:[#allocation2 + $0x1e0] sm:$0xff]  ;;  %v89_v40 = vld [vmem:[#allocation2 + $0xe8] sm:$0xff]  ;;  %v246_v48 = vld [vmem:[#allocation5 + $0x58] sm:$0xff] }
  0x40   :  { %v137_v41 = vadd.f32 %v105_v36, %v73_v35  ;;  %v121_v42 = vadd.f32 %v89_v40, %v57_v38  ;;  %v639_v51 = vpack.c.bf16 %v246_v48, %v245_v47  ;;  %v249_v55 = vld [vmem:[#allocation5 + $0x70] sm:$0xff]  ;;  %v250_v56 = vld [vmem:[#allocation5 + $0x78] sm:$0xff] }
  0x41   :  { %v645_v57 = vpack.c.bf16 %v250_v56, %v249_v55 }
  0x42   :  { %183 = vadd.xlane.f32.xlu1 %v129_v44  ;;  %v106_v44 = vld [vmem:[#allocation2 + $0x1f8] sm:$0xff] }
  0x43   :  { %151 = vadd.xlane.f32.xlu0 %v113_v45  ;;  %v58_v45 = vld [vmem:[#allocation2 + $0xf0] sm:$0xff]  ;;  %v138_v49 = vadd.f32 %v106_v44, %v74_v43 }
  0x44   :  { %631 = vmatpush3.bf16.xpose.msra.mxu0 %v630_v7  ;;  %v122_v50 = vadd.f32 %v90_v46, %v58_v45 }
  0x45   :  { %632 = vmatprep.subr.bf16.mxu0 %v735_v39 }
  0x46   :  { %185 = vadd.xlane.f32.xlu1 %v130_v52  ;;  %v247_v52 = vld [vmem:[#allocation5 + $0x60] sm:$0xff] }
  0x47   :  { %153 = vadd.xlane.f32.xlu0 %v114_v53  ;;  %v248_v53 = vld [vmem:[#allocation5 + $0x68] sm:$0xff] }
  0x48   :  { %v642_v54 = vpack.c.bf16 %v248_v53, %v247_v52 }
  0x4a   :  { %187 = vadd.xlane.f32.xlu1 %v131_v59 }
  0x4b   :  { %155 = vadd.xlane.f32.xlu0 %v115_v60 }
  0x4c   :  { %634 = vmatpush3.bf16.xpose.msra.mxu0 %v633_v22 }
  0x4d   :  { %635 = vmatprep.subr.bf16.mxu0 %v735_v39 }
  0x4e   :  { %189 = vadd.xlane.f32.xlu1 %v132_v3 }
  0x4f   :  { %157 = vadd.xlane.f32.xlu0 %v116_v4 }
  0x52   :  { %191 = vadd.xlane.f32.xlu1 %v133_v10 }
  0x53   :  { %159 = vadd.xlane.f32.xlu0 %v117_v11  ;;  %v291_v11 = vand.u32 127, %v290_v8 }
  0x54   :  { %637 = vmatpush3.bf16.xpose.msra.mxu0 %v636_v37 }
  0x55   :  { %638 = vmatprep.subr.bf16.mxu0 %v735_v39  ;;  %v296_v13 = vadd.s32 4294967288, %v291_v11  ;;  %v303_v14 = vadd.s32 4294967280, %v291_v11  ;;  %v310_v16 = vadd.s32 4294967272, %v291_v11  ;;  %v317_v17 = vadd.s32 4294967264, %v291_v11 }
  0x56   :  { %193 = vadd.xlane.f32.xlu1 %v134_v18  ;;  %v331_v20 = vadd.s32 4294967248, %v291_v11  ;;  %v338_v21 = vadd.s32 4294967240, %v291_v11  ;;  %v808_v22 = vsub.s32 %v291_v11, %v801_v12  ;;  %v345_v23 = vadd.s32 4294967232, %v291_v11 }
  0x57   :  { %161 = vadd.xlane.f32.xlu0 %v118_v19  ;;  %v324_v19 = vadd.s32 4294967256, %v291_v11  ;;  %v352_v24 = vadd.s32 4294967224, %v291_v11  ;;  %v812_v27 = vsub.s32 %v303_v14, %v801_v12  ;;  %v366_v29 = vadd.s32 4294967208, %v291_v11 }
  0x58   :  { %v817_v30 = vsub.s32 %v310_v16, %v801_v12  ;;  %v820_v31 = vsub.s32 %v317_v17, %v801_v12  ;;  %v828_v35 = vsub.s32 %v331_v20, %v801_v12  ;;  %v831_v36 = vsub.s32 %v338_v21, %v801_v12 }
  0x59   :  { %v380_v37 = vadd.s32 4294967192, %v291_v11  ;;  %v834_v40 = vsub.s32 %v345_v23, %v801_v12  ;;  %v843_v46 = vsub.s32 %v366_v29, %v801_v12  ;;  %v387_v47 = vadd.s32 4294967184, %v291_v11 }
  0x5a   :  { %195 = vadd.xlane.f32.xlu1 %v135_v25  ;;  %v359_v25 = vadd.s32 4294967216, %v291_v11 }
  0x5b   :  { %163 = vadd.xlane.f32.xlu0 %v119_v26  ;;  %v299_v26 = vsub.s32 %v296_v13, %v801_v12  ;;  %v849_v56 = vsub.s32 %v380_v37, %v801_v12  ;;  %v854_v8 = vsub.s32 %v387_v47, %v801_v12 }
  0x5c   :  { %640 = vmatpush3.bf16.xpose.msra.mxu0 %v639_v51 }
  0x5d   :  { %641 = vmatprep.subr.bf16.mxu0 %v735_v39 }
  0x5e   :  { %197 = vadd.xlane.f32.xlu1 %v136_v33  ;;  %v373_v33 = vadd.s32 4294967200, %v291_v11 }
  0x5f   :  { %165 = vadd.xlane.f32.xlu0 %v120_v34  ;;  %v825_v34 = vsub.s32 %v324_v19, %v801_v12 }
  0x60   :  { %v846_v52 = vsub.s32 %v373_v33, %v801_v12 }
  0x62   :  { %199 = vadd.xlane.f32.xlu1 %v137_v41  ;;  %v837_v41 = vsub.s32 %v352_v24, %v801_v12 }
  0x63   :  { %167 = vadd.xlane.f32.xlu0 %v121_v42  ;;  %v840_v42 = vsub.s32 %v359_v25, %v801_v12 }
  0x64   :  { %643 = vmatpush3.bf16.xpose.msra.mxu0 %v642_v54 }
  0x65   :  { %644 = vmatprep.subr.bf16.mxu0 %v735_v39 }
  0x66   :  { %201 = vadd.xlane.f32.xlu1 %v138_v49 }
  0x67   :  { %169 = vadd.xlane.f32.xlu0 %v122_v50 }
  0x6c   :  { %646 = vmatpush3.bf16.xpose.msra.mxu0 %v645_v57 }
  0xb7   :  { %v172_v59 = vpop.xlane.xlu1 %171 }
  0xb8   :  { %v140_v60 = vpop.xlane.xlu0 %139  ;;  %v219_v48 = vmul.f32 0.00390625, %v172_v59 }
  0xb9   :  { %v203_v53 = vmul.f32 0.00390625, %v140_v60 }
  0xba   :  { %v404_v60 = vrot.slane %v219_v48, %v808_v22 }
  0xbb   :  { %v174_v61 = vpop.xlane.xlu1 %173 }
  0xbc   :  { %v142_v62 = vpop.xlane.xlu0 %141  ;;  %v220_v38 = vmul.f32 0.00390625, %v174_v61 }
  0xbd   :  { %v204_v43 = vmul.f32 0.00390625, %v142_v62  ;;  %v394_v62 = vadd.s32 4294967176, %v291_v11 }
  0xbe   :  { %v408_v57 = vrot.slane %v220_v38, %v299_v26 }
  0xbf   :  { %v176_v63 = vpop.xlane.xlu1 %175  ;;  %v868_v20 = vsub.s32 %v394_v62, %v801_v12 }
  0xc0   :  { %v144_v0 = vpop.xlane.xlu0 %143  ;;  %v221_v44 = vmul.f32 0.00390625, %v176_v63  ;;  %v300_v63 = vrot.slane %v204_v43, %v299_v26  ;;  %v409_v16 = vsel %vm301_vm1, %v408_v57, %v404_v60 }
  0xc1   :  { %v205_v49 = vmul.f32 0.00390625, %v144_v0 }
  0xc2   :  { %v413_v59 = vrot.slane %v221_v44, %v812_v27 }
  0xc3   :  { %v178_v1 = vpop.xlane.xlu1 %177 }
  0xc4   :  { %v146_v2 = vpop.xlane.xlu0 %145  ;;  %v222_v50 = vmul.f32 0.00390625, %v178_v1  ;;  %v414_v21 = vsel %vm308_vm2, %v413_v59, %v409_v16 }
  0xc5   :  { %v206_v54 = vmul.f32 0.00390625, %v146_v2  ;;  %v307_v2 = vrot.slane %v205_v49, %v812_v27 }
  0xc7   :  { %v180_v3 = vpop.xlane.xlu1 %179  ;;  %v314_v11 = vrot.slane %v206_v54, %v817_v30 }
  0xc8   :  { %v148_v4 = vpop.xlane.xlu0 %147  ;;  %v223_v55 = vmul.f32 0.00390625, %v180_v3  ;;  %v418_v3 = vrot.slane %v222_v50, %v817_v30 }
  0xc9   :  { %v207_v58 = vmul.f32 0.00390625, %v148_v4 }
  0xca   :  { %v419_v25 = vsel %vm315_vm3, %v418_v3, %v414_v21 }
  0xcb   :  { %v182_v5 = vpop.xlane.xlu1 %181  ;;  %v321_v17 = vrot.slane %v207_v58, %v820_v31 }
  0xcc   :  { %v791_v6 = vpop.xlane.xlu0 %149  ;;  %v224_v61 = vmul.f32 0.00390625, %v182_v5  ;;  %v295_v5 = vrot.slane %v203_v53, %v808_v22 }
  0xcd   :  { %v208_v0 = vmul.f32 0.00390625, %v791_v6  ;;  %v423_v6 = vrot.slane %v223_v55, %v820_v31 }
  0xce   :  { %v428_v19 = vrot.slane %v224_v61, %v825_v34 }
  0xcf   :  { %v793_v39 = vpop.xlane.xlu1 %183  ;;  %v328_v22 = vrot.slane %v208_v0, %v825_v34  ;;  %v424_v30 = vsel %vm322_vm4, %v423_v6, %v419_v25 }
  0xd0   :  { %v795_v7 = vpop.xlane.xlu0 %151  ;;  %v225_v13 = vmul.f32 0.00390625, %v793_v39  ;;  %v302_v39 = vsel %vm301_vm1, %v300_v63, %v295_v5  ;;  %v429_v34 = vsel %vm329_vm5, %v428_v19, %v424_v30 }
  0xd1   :  { %v209_v14 = vmul.f32 0.00390625, %v795_v7  ;;  %v309_v24 = vsel %vm308_vm2, %v307_v2, %v302_v39 }
  0xd2   :  { %v433_v26 = vrot.slane %v225_v13, %v828_v35  ;;  %v316_v29 = vsel %vm315_vm3, %v314_v11, %v309_v24 }
  0xd3   :  { %v797_v9 = vpop.xlane.xlu1 %185  ;;  %v335_v31 = vrot.slane %v209_v14, %v828_v35  ;;  %v323_v33 = vsel %vm322_vm4, %v321_v17, %v316_v29 }
  0xd4   :  { %v799_v10 = vpop.xlane.xlu0 %153  ;;  %v226_v23 = vmul.f32 0.00390625, %v797_v9 }
  0xd5   :  { %v210_v27 = vmul.f32 0.00390625, %v799_v10  ;;  %v330_v10 = vsel %vm329_vm5, %v328_v22, %v323_v33  ;;  %v570_v33 = vld [vmem:[%s941_s2] ss:$0 sm:$0xff] }
  0xd6   :  { %v438_v43 = vrot.slane %v226_v23, %v831_v36 }
  0xd7   :  { %v803_v15 = vpop.xlane.xlu1 %187  ;;  %v342_v48 = vrot.slane %v210_v27, %v831_v36 }
  0xd8   :  { %v805_v18 = vpop.xlane.xlu0 %155  ;;  %v227_v9 = vmul.f32 0.00390625, %v803_v15  ;;  %v434_v15 = vsel %vm336_vm6, %v433_v26, %v429_v34 }
  0xd9   :  { %v211_v37 = vmul.f32 0.00390625, %v805_v18  ;;  %v337_v18 = vsel %vm336_vm6, %v335_v31, %v330_v10  ;;  %v439_v61 = vsel %vm343_vm7, %v438_v43, %v434_v15 }
  0xda   :  { %v344_v59 = vsel %vm343_vm7, %v342_v48, %v337_v18 }
  0xdb   :  { %v814_v28 = vpop.xlane.xlu1 %189  ;;  %v349_v57 = vrot.slane %v211_v37, %v834_v40 }
  0xdc   :  { %v822_v32 = vpop.xlane.xlu0 %157  ;;  %v228_v38 = vmul.f32 0.00390625, %v814_v28  ;;  %v443_v28 = vrot.slane %v227_v9, %v834_v40 }
  0xdd   :  { %v212_v44 = vmul.f32 0.00390625, %v822_v32 }
  0xde   :  { %v448_v32 = vrot.slane %v228_v38, %v837_v41  ;;  %v444_v2 = vsel %vm350_vm8, %v443_v28, %v439_v61 }
  0xdf   :  { %v192_v45 = vpop.xlane.xlu1 %191  ;;  %v356_v36 = vrot.slane %v212_v44, %v837_v41  ;;  %v351_v41 = vsel %vm350_vm8, %v349_v57, %v344_v59 }
  0xe0   :  { %v160_v51 = vpop.xlane.xlu0 %159  ;;  %v229_v47 = vmul.f32 0.00390625, %v192_v45  ;;  %v449_v5 = vsel %vm357_vm9, %v448_v32, %v444_v2 }
  0xe1   :  { %v213_v49 = vmul.f32 0.00390625, %v160_v51 }
  0xe2   :  { %v453_v51 = vrot.slane %v229_v47, %v840_v42 }
  0xe3   :  { %v194_v1 = vpop.xlane.xlu1 %193  ;;  %v363_v0 = vrot.slane %v213_v49, %v840_v42  ;;  %v358_v42 = vsel %vm357_vm9, %v356_v36, %v351_v41 }
  0xe4   :  { %v162_v4 = vpop.xlane.xlu0 %161  ;;  %v230_v50 = vmul.f32 0.00390625, %v194_v1  ;;  %v454_v14 = vsel %vm364_vm10, %v453_v51, %v449_v5 }
  0xe5   :  { %v214_v54 = vmul.f32 0.00390625, %v162_v4  ;;  %v365_v19 = vsel %vm364_vm10, %v363_v0, %v358_v42 }
  0xe6   :  { %v458_v1 = vrot.slane %v230_v50, %v843_v46 }
  0xe7   :  { %v196_v7 = vpop.xlane.xlu1 %195  ;;  %v370_v3 = vrot.slane %v214_v54, %v843_v46 }
  0xe8   :  { %v164_v12 = vpop.xlane.xlu0 %163  ;;  %v231_v55 = vmul.f32 0.00390625, %v196_v7  ;;  %v459_v39 = vsel %vm371_vm11, %v458_v1, %v454_v14 }
  0xe9   :  { %v215_v45 = vmul.f32 0.00390625, %v164_v12 }
  0xea   :  { %v463_v13 = vrot.slane %v231_v55, %v846_v52 }
  0xeb   :  { %v198_v35 = vpop.xlane.xlu1 %197  ;;  %v377_v11 = vrot.slane %v215_v45, %v846_v52  ;;  %v372_v52 = vsel %vm371_vm11, %v370_v3, %v365_v19 }
  0xec   :  { %v166_v53 = vpop.xlane.xlu0 %165  ;;  %v232_v58 = vmul.f32 0.00390625, %v198_v35  ;;  %v464_v7 = vsel %vm378_vm12, %v463_v13, %v459_v39 }
  0xed   :  { %v216_v62 = vmul.f32 0.00390625, %v166_v53  ;;  %v379_v25 = vsel %vm378_vm12, %v377_v11, %v372_v52 }
  0xee   :  { %v468_v6 = vrot.slane %v232_v58, %v849_v56 }
  0xef   :  { %v200_v63 = vpop.xlane.xlu1 %199  ;;  %v384_v16 = vrot.slane %v216_v62, %v849_v56 }
  0xf0   :  { %v233_v60 = vmul.f32 0.00390625, %v200_v63  ;;  %v168_v40 = vpop.xlane.xlu0 %167  ;;  %v469_v56 = vsel %vm385_vm13, %v468_v6, %v464_v7 }
  0xf1   :  { %v217_v4 = vmul.f32 0.00390625, %v168_v40  ;;  %v386_v27 = vsel %vm385_vm13, %v384_v16, %v379_v25 }
  0xf2   :  { %v473_v17 = vrot.slane %v233_v60, %v854_v8 }
  0xf3   :  { %v202_v46 = vpop.xlane.xlu1 %201  ;;  %v391_v21 = vrot.slane %v217_v4, %v854_v8 }
  0xf4   :  { %v234_v22 = vmul.f32 0.00390625, %v202_v46  ;;  %v170_v23 = vpop.xlane.xlu0 %169  ;;  %v474_v8 = vsel %vm392_vm14, %v473_v17, %v469_v56 }
  0xf5   :  { %v218_v24 = vmul.f32 0.00390625, %v170_v23  ;;  %v393_v29 = vsel %vm392_vm14, %v391_v21, %v386_v27 }
  0xf6   :  { %v478_v26 = vrot.slane %v234_v22, %v868_v20 }
  0xf7   :  { %v398_v12 = vrot.slane %v218_v24, %v868_v20 }
  0xf8   :  { %v479_v30 = vsel %vm399_vm15, %v478_v26, %v474_v8 }
  0xf9   :  { %v400_v31 = vsel %vm399_vm15, %v398_v12, %v393_v29 }
  0xfa   :  { %v481_v9 = vsel %vm480_vm0, %v479_v30, %v400_v31 }
  0xfb   :  { %621 = vmatmul.mubr.f32.vlgmr.msra.gmra.mrb[0].mxu0 %v481_v9 }
 0x1ce   :  { %v549_v34 = vpop.f32.mrb[0].mxu0 }
 0x1cf   :  { %v550_v37 = vadd.f32 %v570_v33, %v549_v34  ;;  %v622_v38 = vpop.f32.mrb[1].mxu0 }
 0x1d1   :  { %553 = vst [vmem:[#allocation7] sm:$0x3] %v550_v37 }
 0x1d2   :  { %712 = shalt.err (!%p709_p6)
}
 0x1d3   :  { %s713_s18 = scalar_lea.hbm %s942_s3, 32 }
 0x1d4   :  { %p714_p7 = scmp.ne.s32.totalorder %s942_s3, %s713_s18  ;;  %p717_p8 = scmp.lt.u32.totalorder %s713_s18, %s942_s3 }
 0x1d6   :  { %p719_p9 = pnand %p717_p8, %p714_p7 }
 0x1d8   :  { %722 = shalt.err (!%p719_p9)
}
 0x1d9   :  { %563 = dma.vmem_to_hbm [thread:$0]  %s561_s14, 32, %s942_s3, [#allocation4]  }
 0x1da   :  { %727 = dma.done.wait [#allocation4], 32  }
 0x1db   :  { %728 = vsyncadd [#allocation4], 4294967264 }
 0x1dc   :  { %567 = vsyncpa [#allocation3], 1 }
 0x1dd   :  { %568 = vsyncpa [#allocation6], 1 }
 0x1de   :  { %569 = vsyncpa [#allocation4], 1 }

</bundles_post_ra>
